<compile_context>
chip_gen: v7x
topology: tpu7x:2x2x1
jax: 0.10.0
libtpu: 0.0.40
codegen_flags: <defaults>
</compile_context>

<pallas_src>
import jax
import jax.numpy as jnp
from jax.experimental import pallas as pl
from jax.experimental.pallas import tpu as pltpu


def _embedding_onehot_kernel(ids_ref, table_ref, out_ref):
    """ids_ref:   VMEM (tile_rows, pack)  int32  (pre-offset by p*E per column)
    table_ref: VMEM (pack*E, pack*D)   f32    (block-diagonal, bias folded, resident)
    out_ref:   VMEM (tile_rows, pack*D) f32
    """
    tile_rows, pack = ids_ref.shape
    packed_classes = table_ref.shape[0]            # pack * num_embeddings

    ids = ids_ref[...]                             # (tile_rows, pack)
    lanes = jax.lax.broadcasted_iota(jnp.int32, (tile_rows, packed_classes), 1)

    # Packed one-hot: column p of ids is offset into [p*E, (p+1)*E), so the
    # per-column hit masks are disjoint and can simply be OR'ed together.
    hit = lanes == ids[:, 0:1]
    for p in range(1, pack):                       # pack is small & static
        hit = jnp.logical_or(hit, lanes == ids[:, p:p + 1])

    onehot = hit.astype(table_ref.dtype)           # (tile_rows, pack*E)
    out_ref[...] = jnp.dot(onehot, table_ref[...],
                           preferred_element_type=jnp.float32
                           ).astype(out_ref.dtype)


def choose_pack(emb_dim: int) -> int:
    """How many tokens to pack into one 128-lane output row."""
    if emb_dim < 128 and 128 % emb_dim == 0:
        return 128 // emb_dim
    # TODO(synk): lane-padded packing for 128 % emb_dim != 0 cases.
    return 1


def prepare_embedding_params(weight, bias, pack):
    """Fold bias into the table and build the block-diagonal packed table.

    weight: (D, E) float32  -- nn.Linear weight
    bias:   (D,)   float32
    Returns (pack*E, pack*D) float32, done ONCE at init (persistent param).
    """
    table_b = weight.T.astype(jnp.float32) + bias.astype(jnp.float32)[None, :]  # (E, D)
    if pack == 1:
        return table_b
    eye = jnp.eye(pack, dtype=table_b.dtype)                    # (pack, pack)
    E, D = table_b.shape
    packed = jnp.einsum("pq,ed->peqd", eye, table_b)            # (pack, E, pack, D)
    return packed.reshape(pack * E, pack * D)


def embedding_forward(e, table_packed, *, num_embeddings, emb_dim, pack,
                      tile_n=512):
    """Embedding forward: equivalent to one_hot(e) @ W.T + b.

    e:            (B, S) integer indices.
    table_packed: (pack*E, pack*D) float32 from prepare_embedding_params.
    Returns (B, S, emb_dim) float32.
    """
    B, S = e.shape
    N = B * S

    # Keep the VMEM-resident table honest w.r.t. scoped VMEM limits.
    table_bytes = table_packed.size * 4
    assert table_bytes <= 8 * 1024 * 1024, (
        "table too large for the VMEM-resident path")  # TODO(synk): HBM gather fallback

    # tile_n: multiple of pack*8 (aligned packed tile), <= 512, no useless padding.
    granule = pack * 8
    tile_n = max(granule, min(tile_n, pl.cdiv(N, granule) * granule))
    tile_n = (tile_n // granule) * granule
    n_pad = pl.cdiv(N, tile_n) * tile_n
    tile_rows = tile_n // pack
    packed_rows = n_pad // pack

    # Clamp (OOB indices would select a wrong-but-safe row instead of faulting),
    # pad, pack, and pre-offset each packed column into its block-diag segment.
    ids = jnp.clip(e.reshape(N).astype(jnp.int32), 0, num_embeddings - 1)
    ids = jnp.pad(ids, (0, n_pad - N))
    ids = ids.reshape(packed_rows, pack)
    ids = ids + jnp.arange(pack, dtype=jnp.int32)[None, :] * num_embeddings

    out_packed = pl.pallas_call(
        _embedding_onehot_kernel,
        out_shape=jax.ShapeDtypeStruct((packed_rows, pack * emb_dim), jnp.float32),
        grid_spec=pltpu.PrefetchScalarGridSpec(
            num_scalar_prefetch=0,
            grid=(n_pad // tile_n,),
            in_specs=[
                pl.BlockSpec((tile_rows, pack), lambda i: (i, 0)),      # ids tile
                pl.BlockSpec(table_packed.shape, lambda i: (0, 0)),     # VMEM-resident table
            ],
            out_specs=pl.BlockSpec((tile_rows, pack * emb_dim),
                                   lambda i: (i, 0)),
        ),
        compiler_params=pltpu.CompilerParams(
            dimension_semantics=("parallel",)),                          # megacore on v7x
    )(ids, table_packed)

    # Packed (n_pad//pack, pack*D) has identical row-major bytes as (n_pad, D).
    out = out_packed.reshape(n_pad, emb_dim)[:N]
    return out.reshape(B, S, emb_dim)


if __name__ == "__main__":
    # Small, deterministic setup
    num_embeddings = 16
    embedding_dim = 32
    B, S = 2, 32          # N = 64 tokens

    key = jax.random.PRNGKey(0)
    k_w, k_b, k_e = jax.random.split(key, 3)

    # nn.Linear default init: U(-1/sqrt(fan_in), 1/sqrt(fan_in)), fan_in = num_embeddings
    bound = 1.0 / jnp.sqrt(jnp.float32(num_embeddings))
    weight = jax.random.uniform(
        k_w, (embedding_dim, num_embeddings), jnp.float32, -bound, bound)
    bias = jax.random.uniform(
        k_b, (embedding_dim,), jnp.float32, -bound, bound)

    # Persistent packed table (built once at init, bias folded in).
    pack = choose_pack(embedding_dim)
    table_packed = prepare_embedding_params(weight, bias, pack)

    e = jax.random.randint(k_e, (B, S), 0, num_embeddings, dtype=jnp.int32)

    out = embedding_forward(e, table_packed,
                            num_embeddings=num_embeddings,
                            emb_dim=embedding_dim, pack=pack)
    out = jax.block_until_ready(out)

    # reference: one_hot(e) @ W.T + b == W.T[e] + b
    ref = weight.T[e] + bias
    assert out.shape == (B, S, embedding_dim)
    assert jnp.allclose(out, ref, atol=1e-5, rtol=1e-5)

    print("KERNEL_OK")
</pallas_src>

<mosaic_0001>
module attributes {stable_mosaic.version = 11 : i64} {
  func.func @_embedding_onehot_kernel(%arg0: i32, %arg1: memref<16x4xi32, #tpu.memory_space<vmem>>, %arg2: memref<64x128xf32, #tpu.memory_space<vmem>>, %arg3: memref<16x128xf32, #tpu.memory_space<vmem>>) attributes {dimension_semantics = [#tpu.dimension_semantics<parallel>], iteration_bounds = array<i64: 1>, scalar_prefetch = 0 : i64, scratch_operands = 0 : i64, tpu.core_type = #tpu.core_type<tc>, window_params = [{transform_indices = @transform_0, window_bounds = array<i64: 16, 4>}, {pipeline_mode = #tpu.pipeline_mode<synchronous>, transform_indices = @transform_1, window_bounds = array<i64: 64, 128>}, {transform_indices = @transform_2, window_bounds = array<i64: 16, 128>}]} {
    %c0 = arith.constant 0 : index
    %c0_0 = arith.constant 0 : index
    %0 = vector.load %arg1[%c0, %c0_0] : memref<16x4xi32, #tpu.memory_space<vmem>>, vector<16x4xi32>
    %1 = tpu.iota {dimensions = array<i32: 1>} : vector<16x64xi32>
    %2 = vector.extract_strided_slice %0 {offsets = [0, 0], sizes = [16, 1], strides = [1, 1]} : vector<16x4xi32> to vector<16x1xi32>
    %3 = vector.broadcast %2 : vector<16x1xi32> to vector<16x64xi32>
    %4 = arith.cmpi eq, %1, %3 : vector<16x64xi32>
    %5 = vector.extract_strided_slice %0 {offsets = [0, 1], sizes = [16, 1], strides = [1, 1]} : vector<16x4xi32> to vector<16x1xi32>
    %6 = vector.broadcast %5 : vector<16x1xi32> to vector<16x64xi32>
    %7 = arith.cmpi eq, %1, %6 : vector<16x64xi32>
    %8 = arith.ori %4, %7 : vector<16x64xi1>
    %9 = vector.extract_strided_slice %0 {offsets = [0, 2], sizes = [16, 1], strides = [1, 1]} : vector<16x4xi32> to vector<16x1xi32>
    %10 = vector.broadcast %9 : vector<16x1xi32> to vector<16x64xi32>
    %11 = arith.cmpi eq, %1, %10 : vector<16x64xi32>
    %12 = arith.ori %8, %11 : vector<16x64xi1>
    %13 = vector.extract_strided_slice %0 {offsets = [0, 3], sizes = [16, 1], strides = [1, 1]} : vector<16x4xi32> to vector<16x1xi32>
    %14 = vector.broadcast %13 : vector<16x1xi32> to vector<16x64xi32>
    %15 = arith.cmpi eq, %1, %14 : vector<16x64xi32>
    %16 = arith.ori %12, %15 : vector<16x64xi1>
    %17 = arith.extui %16 : vector<16x64xi1> to vector<16x64xi32>
    %18 = arith.sitofp %17 : vector<16x64xi32> to vector<16x64xf32>
    %c0_1 = arith.constant 0 : index
    %c0_2 = arith.constant 0 : index
    %19 = vector.load %arg2[%c0_1, %c0_2] : memref<64x128xf32, #tpu.memory_space<vmem>>, vector<64x128xf32>
    %cst = arith.constant dense<0.000000e+00> : vector<16x128xf32>
    %20 = tpu.matmul %18, %19, %cst {dimension_numbers = #tpu.dot_dimension_numbers<[1], [0], [0], [1], [0, 0, 1, 1], [], []>} : vector<16x64xf32>, vector<64x128xf32>, vector<16x128xf32> -> vector<16x128xf32>
    %c0_3 = arith.constant 0 : index
    %c0_4 = arith.constant 0 : index
    %21 = vector.load %arg3[%c0_3, %c0_4] : memref<16x128xf32, #tpu.memory_space<vmem>>, vector<16x128xf32>
    tpu.vector_store %arg3[%c0_3, %c0_4], %20 {strides = array<i32>} : memref<16x128xf32, #tpu.memory_space<vmem>>, vector<16x128xf32>,
    return
  }
  func.func @transform_0(%arg0: i32) -> (i32, i32) {
    %c0_i32 = arith.constant 0 : i32
    %c0_i32_0 = arith.constant 0 : i32
    return %arg0, %c0_i32 : i32, i32
  }
  func.func @transform_1(%arg0: i32) -> (i32, i32) {
    %c0_i32 = arith.constant 0 : i32
    %c0_i32_0 = arith.constant 0 : i32
    %c0_i32_1 = arith.constant 0 : i32
    return %c0_i32, %c0_i32_0 : i32, i32
  }
  func.func @transform_2(%arg0: i32) -> (i32, i32) {
    %c0_i32 = arith.constant 0 : i32
    %c0_i32_0 = arith.constant 0 : i32
    return %arg0, %c0_i32 : i32, i32
  }
}

</mosaic_0001>

<bundles_post_ra>
// kernel: tpu_custom_call.1
= control target key start
LH: loop header
LB: loop body
LE: loop exit
PB: predicated region body
PF: predicated region fallthrough
CT: control target
= control target key end

     0   :  { %7 = vsyncpa [#allocation3], 0  ;;  %s355_s0 = inlined_call_operand.vmem [shape: s32[16,4], index: 0, kind: input, shape index: {}]   ;;  %s356_s1 = inlined_call_operand.hbm [shape: f32[64,128], index: 1, kind: input, shape index: {}]   ;;  %s357_s2 = inlined_call_operand.hbm [shape: f32[16,128], index: 2, kind: output, shape index: {}]  }
   0x1   :  { %8 = vsyncpa [#allocation4], 0  ;;  %s295_s9 = smov [#allocation2]   ;;  %s247_s13 = scalar_lea.hbm %s356_s1, 1024 }
   0x2   :  { %s16_s10 = sshll.u32 %s295_s9, 4  ;;  %p248_p0 = scmp.ne.s32.totalorder %s356_s1, %s247_s13  ;;  %s17_s10 = int_to_ptr.vmem [resolvable:$true] %s16_s10 }
   0x3   :  { %p251_p1 = scmp.lt.u32.totalorder %s247_s13, %s356_s1 }
   0x5   :  { %p253_p2 = pnand %p251_p1, %p248_p0 }
   0x7   :  { %256 = shalt.err (!%p253_p2)
}
   0x8   :  { %s257_s18 = scalar_lea.vmem %s17_s10, 1024  ;;  %p262_p4 = scmp.lt.s32.totalorder %s17_s10, %s17_s10 }
   0x9   :  { %p258_p3 = scmp.ne.s32.totalorder %s17_s10, %s257_s18  ;;  %p263_p5 = scmp.lt.s32.totalorder %s257_s18, %s257_s18 }
   0xb   :  { %p264_p6 = por %p263_p5, %p262_p4 }
   0xd   :  { %p265_p7 = pnand %p264_p6, %p258_p3 }
   0xf   :  { %268 = shalt.err (!%p265_p7)
}
  0x10   :  { %s296_s19 = smov 128   ;;  %s297_s20 = smov 8  }
  0x11   :  { %22 = dma.hbm_to_vmem [thread:$0]  %s356_s1, 1024, %s17_s10, [#allocation3], %s296_s19, %s296_s19, %s297_s20  }
  0x12   :  { %291 = dma.done.wait [#allocation3], 1024  }
  0x13   :  { %292 = vsyncadd [#allocation3], 4294966272  ;;  %v298_v0 = vmov 0   ;;  %v27_v1 = vld [vmem:[%s355_s0 + $0x8] sm:$0xff]  ;;  %v26_v2 = vld [vmem:[%s355_s0] sm:$0xff]  ;;  %v299_v5 = vmov 1   ;;  %v28_v20 = vlaneseq }
  0x14   :  { %241 = vset.pattern.permute.xlu1 %v298_v0  ;;  %239 = vset.pattern.permute.xlu0 %v298_v0  ;;  %v72_v3 = vld [vmem:[#allocation2] sm:$0xff]  ;;  %v73_v4 = vld [vmem:[#allocation2 + $0x8] sm:$0xff]  ;;  %v74_v7 = vld [vmem:[#allocation2 + $0x10] sm:$0xff]  ;;  %v300_v9 = vmov 2   ;;  %v301_v14 = vmov 3   ;;  %vm80_vm7 = vcmask 523264  }
  0x15   :  { %34 = vperm.xlu1 %241, %v27_v1   ;;  %31 = vperm.xlu0 %239, %v26_v2   ;;  %v214_v6 = vpack.c.bf16 %v73_v4, %v72_v3  ;;  %v75_v8 = vld [vmem:[#allocation2 + $0x18] sm:$0xff]  ;;  %v76_v11 = vld [vmem:[#allocation2 + $0x20] sm:$0xff]  ;;  %v77_v12 = vld [vmem:[#allocation2 + $0x28] sm:$0xff]  ;;  %v29_v22 = vand.u32 127, %v28_v20  ;;  %v302_v27 = vmov 0.0   ;;  %s303_s0 = smov [#allocation5]  }
  0x16   :  { %v218_v10 = vpack.c.bf16 %v75_v8, %v74_v7  ;;  %v222_v13 = vpack.c.bf16 %v77_v12, %v76_v11  ;;  %v78_v15 = vld [vmem:[#allocation2 + $0x30] sm:$0xff]  ;;  %v79_v16 = vld [vmem:[#allocation2 + $0x38] sm:$0xff]  ;;  %s169_s1 = sshll.u32 %s303_s0, 4  ;;  %s170_s1 = int_to_ptr.vmem [resolvable:$true] %s169_s1 }
  0x17   :  { %215 = vmatprep.subr.bf16.mxu0 %v214_v6  ;;  %v226_v17 = vpack.c.bf16 %v79_v16, %v78_v15  ;;  %s269_s27 = scalar_lea.vmem %s170_s1, 256  ;;  %p274_p9 = scmp.lt.s32.totalorder %s170_s1, %s170_s1 }
  0x18   :  { %217 = vmatpush3.bf16.msra.mxu0 %v214_v6  ;;  %p270_p8 = scmp.ne.s32.totalorder %s170_s1, %s269_s27  ;;  %p275_p10 = scmp.lt.s32.totalorder %s269_s27, %s269_s27 }
  0x19   :  { %242 = vset.pattern.permute.xlu1 %v299_v5  ;;  %240 = vset.pattern.permute.xlu0 %v299_v5 }
  0x1a   :  { %42 = vperm.xlu1 %242, %v27_v1   ;;  %39 = vperm.xlu0 %240, %v26_v2   ;;  %p276_p11 = por %p275_p10, %p274_p9 }
  0x1b   :  { %219 = vmatprep.subr.bf16.mxu0 %v218_v10 }
  0x1c   :  { %221 = vmatpush3.bf16.msra.mxu0 %v218_v10  ;;  %p277_p12 = pnand %p276_p11, %p270_p8 }
  0x1d   :  { %223 = vmatprep.subr.bf16.mxu0 %v222_v13 }
  0x1e   :  { %243 = vset.pattern.permute.xlu1 %v300_v9  ;;  %244 = vset.pattern.permute.xlu0 %v300_v9 }
  0x1f   :  { %49 = vperm.xlu1 %243, %v26_v2   ;;  %52 = vperm.xlu0 %244, %v27_v1  }
  0x20   :  { %225 = vmatpush3.bf16.msra.mxu0 %v222_v13 }
  0x21   :  { %227 = vmatprep.subr.bf16.mxu0 %v226_v17 }
  0x23   :  { %245 = vset.pattern.permute.xlu1 %v301_v14  ;;  %246 = vset.pattern.permute.xlu0 %v301_v14 }
  0x24   :  { %59 = vperm.xlu1 %245, %v26_v2   ;;  %229 = vmatpush3.bf16.msra.mxu0 %v226_v17 }
  0x28   :  { %62 = vperm.xlu1 %245, %v27_v1  }
  0x94   :  { %v35_v18 = vpop.permute.xlu1 %34  ;;  %v32_v19 = vpop.permute.xlu0 %31 }
  0x95   :  { %vm36_vm0 = vcmp.eq.s32.totalorder %v29_v22, %v32_v19  ;;  %vm37_vm10 = vcmp.eq.s32.totalorder %v29_v22, %v35_v18 }
  0x99   :  { %v43_v21 = vpop.permute.xlu1 %42  ;;  %v40_v23 = vpop.permute.xlu0 %39 }
  0x9a   :  { %vm44_vm1 = vcmp.eq.s32.totalorder %v29_v22, %v40_v23  ;;  %vm45_vm4 = vcmp.eq.s32.totalorder %v29_v22, %v43_v21 }
  0x9b   :  { %vm46_vm2 = vmor %vm36_vm0, %vm44_vm1 }
  0x9c   :  { %vm47_vm11 = vmor %vm37_vm10, %vm45_vm4 }
  0x9e   :  { %v50_v24 = vpop.permute.xlu1 %49  ;;  %v53_v25 = vpop.permute.xlu0 %52 }
  0x9f   :  { %vm54_vm3 = vcmp.eq.s32.totalorder %v29_v22, %v50_v24  ;;  %vm55_vm8 = vcmp.eq.s32.totalorder %v29_v22, %v53_v25 }
  0xa0   :  { %vm56_vm5 = vmor %vm46_vm2, %vm54_vm3 }
  0xa1   :  { %vm57_vm12 = vmor %vm47_vm11, %vm55_vm8 }
  0xa3   :  { %v60_v26 = vpop.permute.xlu1 %59 }
  0xa4   :  { %vm64_vm6 = vcmp.eq.s32.totalorder %v29_v22, %v60_v26 }
  0xa5   :  { %vm66_vm9 = vmor %vm56_vm5, %vm64_vm6 }
  0xa6   :  { %v181_v28 = vsel %vm66_vm9, 1.0, %v302_v27 }
  0xa7   :  { %v63_v29 = vpop.permute.xlu1 %62  ;;  %211 = vmatprep.mubr.msk.f32.mxu0 %vm80_vm7, %v181_v28 }
  0xa8   :  { %vm65_vm13 = vcmp.eq.s32.totalorder %v29_v22, %v63_v29 }
  0xa9   :  { %vm67_vm14 = vmor %vm57_vm12, %vm65_vm13 }
  0xaa   :  { %v182_v30 = vsel %vm67_vm14, 1.0, %v302_v27 }
  0xab   :  { %212 = vmatmul.mubr.msk.f32.vlgmr.msra.gmra.mrb[0].mxu0 %vm80_vm7, %v182_v30 }
 0x17e   :  { %v213_v31 = vpop.f32.mrb[0].mxu0 }
 0x17f   :  { %163 = vst [vmem:[#allocation5 + $0x8] sm:$0xff] %v213_v31  ;;  %v153_v32 = vpop.f32.mrb[1].mxu0 }
 0x180   :  { %162 = vst [vmem:[#allocation5] sm:$0xff] %v153_v32 }
 0x181   :  { %280 = shalt.err (!%p277_p12)
}
 0x182   :  { %s281_s30 = scalar_lea.hbm %s357_s2, 256 }
 0x183   :  { %p282_p13 = scmp.ne.s32.totalorder %s357_s2, %s281_s30  ;;  %p285_p0 = scmp.lt.u32.totalorder %s281_s30, %s357_s2 }
 0x185   :  { %p287_p1 = pnand %p285_p0, %p282_p13 }
 0x187   :  { %290 = shalt.err (!%p287_p1)
}
 0x188   :  { %175 = dma.vmem_to_hbm [thread:$0]  %s170_s1, 256, %s357_s2, [#allocation4], %s296_s19, %s296_s19, %s297_s20  }
 0x189   :  { %293 = dma.done.wait [#allocation4], 256  }
 0x18a   :  { %294 = vsyncadd [#allocation4], 4294967040 }
 0x18b   :  { %179 = vsyncpa [#allocation3], 1 }
 0x18c   :  { %180 = vsyncpa [#allocation4], 1 }

</bundles_post_ra>
